<compile_context>
chip_gen: v7x
topology: tpu7x:2x2x1
jax: 0.10.0
libtpu: 0.0.40
codegen_flags: <defaults>
</compile_context>

<pallas_src>
import functools

import jax
import jax.numpy as jnp
from jax import lax
from jax.experimental import pallas as pl
from jax.experimental.pallas import tpu as pltpu


# ------------------------------ per-generation config ------------------------------

@functools.lru_cache(maxsize=None)
def _select_config():
    """v5e/v6e (128 MiB VMEM): big row tiles + higher scoped-VMEM limit.
    v7x (64 MiB per-TC VMEM) or unknown: keep headroom below the physical limit."""
    vmem_phys = None
    try:
        info = pltpu.get_tpu_info()
        vmem_phys = getattr(info, "vmem_capacity_bytes", None)
    except Exception:
        vmem_phys = None
    if vmem_phys is not None and vmem_phys >= 128 * 1024 * 1024:
        return {"vmem_limit": 96 * 1024 * 1024, "tm": 1024}   # v5e / v6e
    return {"vmem_limit": 48 * 1024 * 1024, "tm": 512}        # v7x / unknown


def _cparams(n_axes, vmem_limit):
    return pltpu.CompilerParams(
        dimension_semantics=("parallel",) * n_axes,
        vmem_limit_bytes=vmem_limit)


@functools.lru_cache(maxsize=None)
def _roll_supported():
    """Verify pltpu.roll lowers and matches jnp.roll semantics on the sublane axis of a
    3-D tile before relying on it inside the depthwise kernel (slice fallback otherwise)."""
    try:
        a = jnp.arange(4 * 18 * 16, dtype=jnp.float32).reshape(4, 18, 16)

        def _k(x_ref, o_ref):
            o_ref[...] = pltpu.roll(x_ref[...], shift=5, axis=1)

        out = pl.pallas_call(
            _k, out_shape=jax.ShapeDtypeStruct((4, 18, 16), jnp.float32))(a)
        return bool(jnp.array_equal(out, jnp.roll(a, 5, axis=1)))
    except Exception:
        return False


# ----------------------------------- Pallas kernels ---------------------------------

def _pw_kernel(x_ref, w_ref, b_ref, o_ref, *, act):
    # x: (TM, Cin) bf16   w: (Cin, Cout) bf16 (BN scale folded)   b: (1, Cout) f32
    y = jnp.dot(x_ref[...], w_ref[...], preferred_element_type=jnp.float32)
    y = y + b_ref[...]                           # folded BatchNorm bias
    if act:
        y = jnp.clip(y, 0.0, 6.0)                # relu6
    o_ref[...] = y.astype(o_ref.dtype)


def _pw_mask_kernel(x_ref, w_ref, b_ref, m_ref, o_ref, *, act):
    # Expand 1x1 conv on the zero-padded layout.  Halo rows must hold true zeros
    # (relu6(expand_bias) != 0), so this cheap mem-bound kernel zeroes them at write
    # time instead of the VALU-bound depthwise kernel re-masking the whole map.
    y = jnp.dot(x_ref[...], w_ref[...], preferred_element_type=jnp.float32)
    y = y + b_ref[...]
    if act:
        y = jnp.clip(y, 0.0, 6.0)
    y = y * m_ref[...]                           # (TM, 1): 1.0 interior / 0.0 halo
    o_ref[...] = y.astype(o_ref.dtype)


def _pw_res_kernel(x_ref, w_ref, b_ref, id_ref, o_ref):
    # project 1x1 conv + folded BN + fused residual add (bf16 identity, bf16 output)
    y = jnp.dot(x_ref[...], w_ref[...], preferred_element_type=jnp.float32)
    y = y + b_ref[...]
    y = y + id_ref[...].astype(jnp.float32)
    o_ref[...] = y.astype(o_ref.dtype)


def _dw_se_kernel(x_ref, wd_ref, bd_ref, w1_ref, b1_ref, w2_ref, b2_ref, o_ref,
                  *, K, S, Ho, Wo, use_roll):
    # x: (1, Hp, Wp, C) bf16 (kept resident in bf16; halo rows are already true zeros)
    # wd: (K*K, C) f32 (BN scale folded)   bd: (1, C)
    # w1: (C, Cr) bf16  b1: (1, Cr)   w2: (Cr, C) bf16  b2: (1, C)   o: (1, Ho, Wo, C)
    x = x_ref[0]
    Hp, Wp, C = x.shape
    wd = wd_ref[...]                             # hoisted out of the tap loop
    w_ext = (Wo - 1) * S + 1

    acc = None
    for kh in range(K):
        # kh offset + H-stride act on the outer (untiled) axis: cheap, tile-aligned.
        rows = lax.slice(x, (kh, 0, 0),
                         (kh + (Ho - 1) * S + 1, Wp, C), (S, 1, 1))
        rows = rows.astype(jnp.float32)          # one (Ho, Wp, C) cast per kh; acc in f32
        for kw in range(K):
            if use_roll and kw:
                # Realign the kw offset with an XLU sublane rotate (XLU has slack while
                # this kernel is VALU-bound) so the W slice starts at 0 instead of an
                # unaligned sublane offset that can materialize a full-size VMEM copy.
                shifted = pltpu.roll(rows, shift=Wp - kw, axis=1)
                patch = lax.slice(shifted, (0, 0, 0), (Ho, w_ext, C), (1, S, 1))
            else:
                patch = lax.slice(rows, (0, kw, 0), (Ho, kw + w_ext, C), (1, S, 1))
            tap = wd[kh * K + kw:kh * K + kw + 1, :].reshape(1, 1, C)
            contrib = patch * tap
            acc = contrib if acc is None else acc + contrib   # first-tap init (no zeros)

    y = acc + bd_ref[...].reshape(1, 1, C)       # folded BN bias
    y = jnp.clip(y, 0.0, 6.0)                    # relu6

    # SE (MobileNetV3 "M"): avgpool -> fc -> relu -> fc -> hard-sigmoid -> scale
    s = jnp.mean(y, axis=(0, 1), keepdims=True).reshape(1, C)
    h = jnp.dot(s.astype(jnp.bfloat16), w1_ref[...],
                preferred_element_type=jnp.float32) + b1_ref[...]
    h = jnp.maximum(h, 0.0)
    g = jnp.dot(h.astype(jnp.bfloat16), w2_ref[...],
                preferred_element_type=jnp.float32) + b2_ref[...]
    g = jnp.clip(g + 3.0, 0.0, 6.0) * (1.0 / 6.0)            # hard sigmoid
    o_ref[0] = (y * g.reshape(1, 1, C)).astype(o_ref.dtype)


# -------------------------------- pallas_call wrappers -------------------------------

def _pointwise(x2d, w, b, *, act, out_dtype, identity2d=None, halo_mask=None,
               tm, vmem_limit):
    """Row-tiled 1x1 conv (matmul) + folded-BN bias (+ halo zeroing or fused residual)."""
    M, Cin = x2d.shape
    Cout = w.shape[1]
    if M <= tm:
        TM = M                                   # single full-extent block
    else:
        TM = max(8, (tm // 8) * 8)               # sublane-aligned; ragged tail is masked
    grid = (pl.cdiv(M, TM),)

    # NOTE: for tiny Cout (<128 lanes, as in this toy config) output stores are
    # lane-masked (vst.msk).  TODO(synk): add a transposed (Cout, M) out_spec variant
    # (lane dim = M -> dense vst) for small-Cout projections; it also yields
    # channels-first layout for free and lets the residual read NCHW directly.
    # TODO(synk): if profiling shows exposed DMA here (tiny matmul K), add
    # pipeline_mode=pl.Buffered(3) on the x2d / identity2d BlockSpecs.
    in_specs = [pl.BlockSpec((TM, Cin), lambda i: (i, 0)),
                pl.BlockSpec((Cin, Cout), lambda i: (0, 0)),
                pl.BlockSpec((1, Cout), lambda i: (0, 0))]
    args = [x2d, w, b]
    if identity2d is not None:
        kern = _pw_res_kernel
        in_specs.append(pl.BlockSpec((TM, Cout), lambda i: (i, 0)))
        args.append(identity2d)
    elif halo_mask is not None:
        kern = functools.partial(_pw_mask_kernel, act=act)
        in_specs.append(pl.BlockSpec((TM, 1), lambda i: (i, 0)))
        args.append(halo_mask)
    else:
        kern = functools.partial(_pw_kernel, act=act)

    return pl.pallas_call(
        kern,
        out_shape=jax.ShapeDtypeStruct((M, Cout), out_dtype),
        grid=grid,
        in_specs=in_specs,
        out_specs=pl.BlockSpec((TM, Cout), lambda i: (i, 0)),
        compiler_params=_cparams(1, vmem_limit),
    )(*args)


def _dwconv_se(x_pad, wd, bd, w1, b1, w2, b2, *, K, S, Ho, Wo, use_roll, vmem_limit):
    B, Hp, Wp, C = x_pad.shape
    Cr = w1.shape[1]
    # TODO(synk): for very large feature maps (v7x, 64 MiB VMEM) or B==1 on v7x, add a
    # row-block-tiled variant: grid=(B, n_row_blocks) with the row axis "arbitrary",
    # accumulate the SE spatial sum in a VMEM scratch across row blocks, and apply the
    # per-image SE gate fused into the projection kernel (gate block indexed by image).
    return pl.pallas_call(
        functools.partial(_dw_se_kernel, K=K, S=S, Ho=Ho, Wo=Wo, use_roll=use_roll),
        out_shape=jax.ShapeDtypeStruct((B, Ho, Wo, C), jnp.bfloat16),
        grid=(B,),
        in_specs=[pl.BlockSpec((1, Hp, Wp, C), lambda b: (b, 0, 0, 0)),
                  pl.BlockSpec((K * K, C), lambda b: (0, 0)),
                  pl.BlockSpec((1, C), lambda b: (0, 0)),
                  pl.BlockSpec((C, Cr), lambda b: (0, 0)),
                  pl.BlockSpec((1, Cr), lambda b: (0, 0)),
                  pl.BlockSpec((Cr, C), lambda b: (0, 0)),
                  pl.BlockSpec((1, C), lambda b: (0, 0))],
        out_specs=pl.BlockSpec((1, Ho, Wo, C), lambda b: (b, 0, 0, 0)),
        compiler_params=_cparams(1, vmem_limit),
    )(x_pad, wd, bd, w1, b1, w2, b2)


# ---------------------------------- parameter folding --------------------------------

def _fold_params(p):
    """Fold eval-mode BN scales into weights; cast MXU matmul weights to bf16."""
    fp = {}
    if 'w_exp' in p:
        fp['w_exp'] = (p['w_exp'] * p['s_exp']).astype(jnp.bfloat16)
        fp['b_exp'] = p['b_exp']
    fp['wd'] = p['wd'] * p['s_dw']               # depthwise weights stay f32 (VPU)
    fp['b_dw'] = p['b_dw']
    fp['w_se1'] = p['w_se1'].astype(jnp.bfloat16)
    fp['b_se1'] = p['b_se1']
    fp['w_se2'] = p['w_se2'].astype(jnp.bfloat16)
    fp['b_se2'] = p['b_se2']
    fp['w_proj'] = (p['w_proj'] * p['s_proj']).astype(jnp.bfloat16)
    fp['b_proj'] = p['b_proj']
    return fp


# ----------------------------------- module forward ----------------------------------

def inverted_residual(x_nchw, p, *, kernel_size, stride, tm=None):
    B, Cin, H, W = x_nchw.shape
    C = p['wd'].shape[1]
    Cout = p['w_proj'].shape[1]
    K, S = kernel_size, stride
    pad = (K - 1) // 2
    Hp, Wp = H + 2 * pad, W + 2 * pad
    Ho = (Hp - K) // S + 1
    Wo = (Wp - K) // S + 1
    use_res = (S == 1 and Cin == Cout)
    if use_res:
        assert Ho == H and Wo == W, "residual path needs matching spatial dims"
    has_expand = 'w_exp' in p

    cfg = _select_config()
    vmem_limit = cfg["vmem_limit"]
    if tm is None:
        tm = cfg["tm"]

    fp = _fold_params(p)
    # NHWC keeps channels on the lane dim inside every kernel.  The module contract is
    # NCHW in/out, hence one transpose at entry/exit; inner blocks of a full network
    # would stay NHWC and skip these.
    x = jnp.transpose(x_nchw, (0, 2, 3, 1)).astype(jnp.bfloat16)       # NHWC bf16

    # Pad only the narrow input once (cheap).  The wide expanded tensor is never padded
    # or copied again in HBM: the expand matmul runs on the padded layout and writes
    # true zeros into the halo rows itself.
    x_pad = jnp.pad(x, ((0, 0), (pad, pad), (pad, pad), (0, 0)))

    if has_expand:
        if pad > 0:
            halo = jnp.pad(jnp.ones((H, W), jnp.float32), ((pad, pad), (pad, pad)))
            halo_mask = jnp.broadcast_to(halo, (B, Hp, Wp)).reshape(B * Hp * Wp, 1)
        else:
            halo_mask = None
        xe2d = _pointwise(x_pad.reshape(B * Hp * Wp, Cin),
                          fp['w_exp'], fp['b_exp'],
                          act=True, out_dtype=jnp.bfloat16,
                          halo_mask=halo_mask, tm=tm, vmem_limit=vmem_limit)
        xdw = xe2d.reshape(B, Hp, Wp, C)
    else:
        xdw = x_pad                                   # halo already true zeros

    # depthwise conv + BN + relu6 + SE (fused, one image per grid step)
    use_roll = _roll_supported()
    dw = functools.partial(_dwconv_se, xdw, fp['wd'], fp['b_dw'],
                           fp['w_se1'], fp['b_se1'], fp['w_se2'], fp['b_se2'],
                           K=K, S=S, Ho=Ho, Wo=Wo, vmem_limit=vmem_limit)
    try:
        y = dw(use_roll=use_roll)
    except Exception:
        if not use_roll:
            raise
        y = dw(use_roll=False)
    # TODO(synk): with_se=False variant would skip the SE tail inside _dw_se_kernel.

    # project: 1x1 conv + folded BN (+ fused residual).  bf16 output / bf16 identity
    # halve the HBM traffic of this memory-bound matmul.
    y2d = y.reshape(B * Ho * Wo, C)
    identity2d = x.reshape(B * H * W, Cin) if use_res else None
    out2d = _pointwise(y2d, fp['w_proj'], fp['b_proj'], act=False,
                       out_dtype=jnp.bfloat16, identity2d=identity2d,
                       tm=tm, vmem_limit=vmem_limit)
    out = out2d.reshape(B, Ho, Wo, Cout)
    return jnp.transpose(out, (0, 3, 1, 2))                            # NCHW, bf16


# ----------------------------------- parameter init ----------------------------------

def init_params(key, in_channels, channels, out_channels, kernel_size, reduction=4):
    ks = jax.random.split(key, 16)

    def bn_fold(kg, kb, km, kv, c):
        gamma = jax.random.uniform(kg, (c,), jnp.float32, 0.5, 1.5)
        beta = 0.1 * jax.random.normal(kb, (c,), jnp.float32)
        mean = 0.1 * jax.random.normal(km, (c,), jnp.float32)
        var = jax.random.uniform(kv, (c,), jnp.float32, 0.5, 1.5)
        scale = gamma / jnp.sqrt(var + 1e-5)
        bias = beta - mean * scale
        return scale.reshape(1, c), bias.reshape(1, c)

    p = {}
    if in_channels != channels:
        p['w_exp'] = 0.2 * jax.random.normal(ks[0], (in_channels, channels), jnp.float32)
        p['s_exp'], p['b_exp'] = bn_fold(ks[1], ks[2], ks[3], ks[4], channels)
    p['wd'] = 0.2 * jax.random.normal(
        ks[5], (kernel_size * kernel_size, channels), jnp.float32)
    p['s_dw'], p['b_dw'] = bn_fold(ks[6], ks[7], ks[8], ks[9], channels)
    cr = channels // reduction
    p['w_se1'] = 0.2 * jax.random.normal(ks[10], (channels, cr), jnp.float32)
    p['b_se1'] = 0.1 * jax.random.normal(ks[11], (1, cr), jnp.float32)
    p['w_se2'] = 0.2 * jax.random.normal(ks[12], (cr, channels), jnp.float32)
    p['b_se2'] = 0.1 * jax.random.normal(ks[13], (1, channels), jnp.float32)
    p['w_proj'] = 0.2 * jax.random.normal(ks[14], (channels, out_channels), jnp.float32)
    p['s_proj'], p['b_proj'] = bn_fold(*jax.random.split(ks[15], 4), out_channels)
    return p


# ---------------------------------- pure-JAX reference -------------------------------

def reference(x_nchw, p, *, kernel_size, stride):
    """Module forward in plain JAX, mirroring the kernels' precision trades
    (bf16 matmul operands + bf16 intermediate / output HBM round-trips)."""
    B, Cin, H, W = x_nchw.shape
    K, S = kernel_size, stride
    pad = (K - 1) // 2
    fp = _fold_params(p)
    x = jnp.transpose(x_nchw, (0, 2, 3, 1))                  # NHWC
    x_bf = x.astype(jnp.bfloat16)

    if 'w_exp' in p:
        y = jnp.dot(x_bf.reshape(-1, Cin), fp['w_exp'],
                    preferred_element_type=jnp.float32) + fp['b_exp']
        y = jnp.clip(y, 0.0, 6.0)
        y = y.astype(jnp.bfloat16).astype(jnp.float32)       # HBM round-trip
        y = y.reshape(B, H, W, -1)
    else:
        y = x_bf.astype(jnp.float32)
    C = y.shape[-1]

    wdw = fp['wd'].reshape(K, K, 1, C)                       # HWIO, depthwise
    y = lax.conv_general_dilated(y, wdw, (S, S), [(pad, pad), (pad, pad)],
                                 feature_group_count=C,
                                 dimension_numbers=('NHWC', 'HWIO', 'NHWC'),
                                 precision=lax.Precision.HIGHEST)
    y = y + fp['b_dw'].reshape(1, 1, 1, C)
    y = jnp.clip(y, 0.0, 6.0)

    s = jnp.mean(y, axis=(1, 2))                             # (B, C)
    h = jnp.maximum(jnp.dot(s.astype(jnp.bfloat16), fp['w_se1'],
                            preferred_element_type=jnp.float32) + fp['b_se1'], 0.0)
    g = jnp.dot(h.astype(jnp.bfloat16), fp['w_se2'],
                preferred_element_type=jnp.float32) + fp['b_se2']
    g = jnp.clip(g + 3.0, 0.0, 6.0) * (1.0 / 6.0)
    y = (y * g[:, None, None, :]).astype(jnp.bfloat16)       # HBM round-trip

    Ho, Wo = y.shape[1], y.shape[2]
    out = jnp.dot(y.reshape(-1, C), fp['w_proj'],
                  preferred_element_type=jnp.float32) + fp['b_proj']
    out = out.reshape(B, Ho, Wo, -1)
    if S == 1 and Cin == out.shape[-1]:
        out = out + x_bf.astype(jnp.float32)
    out = out.astype(jnp.bfloat16)
    return jnp.transpose(out, (0, 3, 1, 2))


# ----------------------------------------- main ---------------------------------------

if __name__ == "__main__":
    in_channels, channels, out_channels = 8, 16, 8
    kernel_size, stride = 3, 1
    B, H, W = 2, 16, 16

    key = jax.random.PRNGKey(0)
    kx, kp = jax.random.split(key)
    x = jax.random.normal(kx, (B, in_channels, H, W), jnp.float32)
    params = init_params(kp, in_channels, channels, out_channels, kernel_size)

    # tm=256 exercises the multi-tile pointwise path, incl. the ragged last row tile of
    # the expand matmul (2*18*18 = 648 rows); production defaults come from _select_config.
    out = inverted_residual(x, params, kernel_size=kernel_size, stride=stride, tm=256)
    out = jax.block_until_ready(out)

    ref = reference(x, params, kernel_size=kernel_size, stride=stride)
    assert out.shape == ref.shape == (B, out_channels, H, W)
    err = float(jnp.max(jnp.abs(out.astype(jnp.float32) - ref.astype(jnp.float32))))
    # bf16 outputs: tolerance covers 1-2 bf16 ulps of divergence from matmul / conv
    # accumulation-order differences crossing a rounding boundary; real bugs are >>0.1.
    if err > 5e-2:
        raise AssertionError(f"Pallas output mismatch vs reference (max abs err {err})")
    print("KERNEL_OK")
</pallas_src>

<mosaic_0001>
module attributes {stable_mosaic.version = 11 : i64} {
  func.func @_pw_mask_kernel(%arg0: i32, %arg1: memref<256x8xbf16, #tpu.memory_space<vmem>>, %arg2: memref<8x16xbf16, #tpu.memory_space<vmem>>, %arg3: memref<1x16xf32, #tpu.memory_space<vmem>>, %arg4: memref<256x1xf32, #tpu.memory_space<vmem>>, %arg5: memref<256x16xbf16, #tpu.memory_space<vmem>>) attributes {dimension_semantics = [#tpu.dimension_semantics<parallel>], iteration_bounds = array<i64: 3>, scalar_prefetch = 0 : i64, scratch_operands = 0 : i64, tpu.core_type = #tpu.core_type<tc>, window_params = [{transform_indices = @transform_0, window_bounds = array<i64: 256, 8>}, {pipeline_mode = #tpu.pipeline_mode<synchronous>, transform_indices = @transform_1, window_bounds = array<i64: 8, 16>}, {pipeline_mode = #tpu.pipeline_mode<synchronous>, transform_indices = @transform_2, window_bounds = array<i64: 1, 16>}, {transform_indices = @transform_3, window_bounds = array<i64: 256, 1>}, {transform_indices = @transform_4, window_bounds = array<i64: 256, 16>}]} {
    %c0 = arith.constant 0 : index
    %c0_0 = arith.constant 0 : index
    %0 = vector.load %arg1[%c0, %c0_0] : memref<256x8xbf16, #tpu.memory_space<vmem>>, vector<256x8xbf16>
    %c0_1 = arith.constant 0 : index
    %c0_2 = arith.constant 0 : index
    %1 = vector.load %arg2[%c0_1, %c0_2] : memref<8x16xbf16, #tpu.memory_space<vmem>>, vector<8x16xbf16>
    %cst = arith.constant dense<0.000000e+00> : vector<256x16xf32>
    %2 = tpu.matmul %0, %1, %cst {dimension_numbers = #tpu.dot_dimension_numbers<[1], [0], [0], [1], [0, 0, 1, 1], [], []>} : vector<256x8xbf16>, vector<8x16xbf16>, vector<256x16xf32> -> vector<256x16xf32>
    %c0_3 = arith.constant 0 : index
    %c0_4 = arith.constant 0 : index
    %3 = vector.load %arg3[%c0_3, %c0_4] : memref<1x16xf32, #tpu.memory_space<vmem>>, vector<1x16xf32>
    %4 = vector.broadcast %3 : vector<1x16xf32> to vector<256x16xf32>
    %5 = arith.addf %2, %4 : vector<256x16xf32>
    %cst_5 = arith.constant 0.000000e+00 : f32
    %cst_6 = arith.constant 6.000000e+00 : f32
    %6 = vector.broadcast %cst_5 : f32 to vector<256x16xf32>
    %7 = arith.maximumf %6, %5 : vector<256x16xf32>
    %8 = vector.broadcast %cst_6 : f32 to vector<256x16xf32>
    %9 = arith.minimumf %8, %7 : vector<256x16xf32>
    %c0_7 = arith.constant 0 : index
    %c0_8 = arith.constant 0 : index
    %10 = vector.load %arg4[%c0_7, %c0_8] : memref<256x1xf32, #tpu.memory_space<vmem>>, vector<256x1xf32>
    %11 = vector.broadcast %10 : vector<256x1xf32> to vector<256x16xf32>
    %12 = arith.mulf %9, %11 : vector<256x16xf32>
    %13 = arith.truncf %12 : vector<256x16xf32> to vector<256x16xbf16>
    %c0_9 = arith.constant 0 : index
    %c0_10 = arith.constant 0 : index
    %14 = vector.load %arg5[%c0_9, %c0_10] : memref<256x16xbf16, #tpu.memory_space<vmem>>, vector<256x16xbf16>
    tpu.vector_store %arg5[%c0_9, %c0_10], %13 {strides = array<i32>} : memref<256x16xbf16, #tpu.memory_space<vmem>>, vector<256x16xbf16>,
    return
  }
  func.func @transform_0(%arg0: i32) -> (i32, i32) {
    %c0_i32 = arith.constant 0 : i32
    %c0_i32_0 = arith.constant 0 : i32
    return %arg0, %c0_i32 : i32, i32
  }
  func.func @transform_1(%arg0: i32) -> (i32, i32) {
    %c0_i32 = arith.constant 0 : i32
    %c0_i32_0 = arith.constant 0 : i32
    %c0_i32_1 = arith.constant 0 : i32
    return %c0_i32, %c0_i32_0 : i32, i32
  }
  func.func @transform_2(%arg0: i32) -> (i32, i32) {
    %c0_i32 = arith.constant 0 : i32
    %c0_i32_0 = arith.constant 0 : i32
    %c0_i32_1 = arith.constant 0 : i32
    return %c0_i32, %c0_i32_0 : i32, i32
  }
  func.func @transform_3(%arg0: i32) -> (i32, i32) {
    %c0_i32 = arith.constant 0 : i32
    %c0_i32_0 = arith.constant 0 : i32
    return %arg0, %c0_i32 : i32, i32
  }
  func.func @transform_4(%arg0: i32) -> (i32, i32) {
    %c0_i32 = arith.constant 0 : i32
    %c0_i32_0 = arith.constant 0 : i32
    return %arg0, %c0_i32 : i32, i32
  }
}

</mosaic_0001>

<bundles_post_ra>
// kernel: tpu_custom_call.1
= control target key start
LH: loop header
LB: loop body
LE: loop exit
PB: predicated region body
PF: predicated region fallthrough
CT: control target
= control target key end

     0   :  { %s1797_s15 = smov 0   ;;  %s1799_s16 = smov 0   ;;  %s2213_s0 = inlined_call_operand.vmem [shape: bf16[648,8], index: 0, kind: input, shape index: {}]   ;;  %s2214_s1 = inlined_call_operand.vmem [shape: bf16[8,16], index: 1, kind: input, shape index: {}]   ;;  %s2215_s2 = inlined_call_operand.vmem [shape: f32[1,16], index: 2, kind: input, shape index: {}]   ;;  %s2216_s3 = inlined_call_operand.vmem [shape: f32[648,1], index: 3, kind: input, shape index: {}]   ;;  %s2217_s4 = inlined_call_operand.vmem [shape: bf16[648,16], index: 4, kind: output, shape index: {}]  }
   0x1   :  { %s1801_s17 = smov 0  }
   0x2 LB: > { %s1810_s18 = sadd.s32 4294967295, %s1737_s17   ;;  %s1812_s19 = sadd.s32 1, %s1737_s17   ;;  %s1737_s17 = sphi %s1801_s17, %s2224_s17   ;;  %s1733_s16 = sphi %s1799_s16, %s2223_s16   ;;  %s1729_s15 = sphi %s1797_s15, %s2222_s15  }
   0x3   : > { %s112_s20 = ssub.s32 %s1737_s17, %s1812_s19  ;;  %s115_s21 = sadd.s32 1, %s1733_s16 }
   0x4   : > { %p113_p0 = scmp.eq.s32.totalorder %s112_s20, 0  ;;  %p125_p1 = scmp.ne.s32.totalorder %s1733_s16, %s1729_s15 }
   0x5   : > { %p126_p2 = scmp.eq.s32.totalorder %s1810_s18, 2  ;;  %p1398_p3 = scmp.ge.s32.totalorder %s1737_s17, 1 }
   0x6   : > { %s1820_s22 = scalar_select %p113_p0, %s1733_s16, %s115_s21  }
   0x7   : > { %p1822_p4 = por %p126_p2, %p125_p1  ;;  %p190_p5 = scmp.lt.s32.totalorder %s1737_s17, 4 }
   0x9   : > { %p191_p6 = pnand %p1398_p3, %p190_p5 }
   0xa   : > { %v294_v0 = vld [vmem:[%s2214_s1] sm:$0xf] (!%p191_p6)  ;;  %vm431_vm0 = vcmask (!%p191_p6), 1043456   ;;  %s1830_s26 = sshll.u32 (!%p191_p6), %s1810_s18, 5  ;;  %v1771_v1 = vmov (!%p191_p6), 0   ;;  %vm382_vm1 = vcmask (!%p191_p6), 64512  }
   0xb   : > { %194 = sbr.rel (%p191_p6) target bundleno = 353 (0x161), region = 36  ;;  %1666 = vset.pattern.permute.xlu1 (!%p191_p6), %v1771_v1  ;;  %1665 = vset.pattern.permute.xlu0 (!%p191_p6), %v1771_v1  ;;  %v433_v2 = vsel (!%p191_p6), %vm431_vm0, %v294_v0, 0  ;;  %p233_p7 = scmp.lt.s32.totalorder (!%p191_p6), %s1830_s26, 80  ;;  %vm1012_vm2 = vcmask (!%p191_p6), 125952  }
   0xc   : > { %1574 = vmatprep.subr.msk.bf16.mxu0 (!%p191_p6), %vm431_vm0, %v294_v0  ;;  %1575 = vmatprep.subr.msk.bf16.mxu1 (!%p191_p6), %vm431_vm0, %v294_v0  ;;  %s225_s12 = sand.u32 (!%p191_p6), 1, %s1729_s15  }
   0xd   : > { %1539 = vmatpush3.bf16.msra.mxu0 (!%p191_p6), %v433_v2  ;;  %1573 = vmatpush3.bf16.msra.mxu1 (!%p191_p6), %v433_v2  ;;  %s1955_s13 = sshll.u32 (!%p191_p6), %s225_s12, 7 }
   0xe   : > { %s1965_s14 = scalar_lea.vmem (!%p191_p6), [#allocation2], %s1955_s13  }
  0x12   : > { %s234_s27 = scalar_select %p233_p7, %s1830_s26, 80 }
  0x13   : > { %s1053_s15 = ssub.s32 (%p1822_p4), 81, %s1830_s26  ;;  %s1518_s17 = sshll.u32 (%p1822_p4), %s1810_s18, 7 }
  0x14   : > { %s1403_s28 = sshll.u32 %s234_s27, 3  ;;  %s1401_s29 = sshll.u32 %s234_s27, 2 }
  0x15   : > { %s1837_s6 = scalar_lea.vmem %s2216_s3, %s1403_s28  ;;  %s1842_s9 = scalar_lea.vmem %s2213_s0, %s1401_s29 }
  0x16   : > { %v662_v3 = vld [vmem:[%s1837_s6 + $0x10] sm:$0xff]  ;;  %v660_v4 = vld [vmem:[%s1837_s6] sm:$0xff]  ;;  %v1669_v7 = vld [vmem:[%s1842_s9 + $0x8] sm:$0xff]   ;;  %p1054_p8 = scmp.lt.s32.totalorder (%p1822_p4), %s1053_s15, 32  ;;  %s2085_s24 = scalar_lea.vmem (%p1822_p4), %s2217_s4, %s1518_s17  }
  0x17   : > { %704 = vperm.xlu1 %1666, %v662_v3   ;;  %694 = vperm.xlu0 %1665, %v660_v4   ;;  %v1667_v5 = vld [vmem:[%s1842_s9] sm:$0xff]   ;;  %v1670_v8 = vld [vmem:[%s1842_s9 + $0x48] sm:$0xff]   ;;  %v663_v9 = vld [vmem:[%s1837_s6 + $0x18] sm:$0xff] }
  0x18   : > { %v1668_v6 = vld [vmem:[%s1842_s9 + $0x40] sm:$0xff]   ;;  %1540 = vmatprep.mubr.msk.bf16.mxu0 %vm382_vm1, %v1667_v5  ;;  %v661_v10 = vld [vmem:[%s1837_s6 + $0x8] sm:$0xff]  ;;  %v1671_v13 = vld [vmem:[%s1842_s9 + $0x10] sm:$0xff]  }
  0x19   : > { %1556 = vmatprep.mubr.msk.bf16.mxu1 %vm382_vm1, %v1668_v6  ;;  %1541 = vmatmul.mubr.msk.bf16.vlgmr.msra.gmra.mrb[0].mxu0 %vm382_vm1, %v1669_v7  ;;  %v665_v11 = vld [vmem:[%s1837_s6 + $0x28] sm:$0xff]  ;;  %v664_v12 = vld [vmem:[%s1837_s6 + $0x20] sm:$0xff]  ;;  %v1672_v14 = vld [vmem:[%s1842_s9 + $0x50] sm:$0xff]  }
  0x1a   : > { %1557 = vmatmul.mubr.msk.bf16.vlgmr.msra.gmra.mrb[0].mxu1 %vm382_vm1, %v1670_v8  ;;  %1544 = vmatprep.mubr.msk.bf16.mxu0 %vm382_vm1, %v1671_v13  ;;  %v1673_v15 = vld [vmem:[%s1842_s9 + $0x18] sm:$0xff]   ;;  %v666_v18 = vld [vmem:[%s1837_s6 + $0x30] sm:$0xff]  ;;  %v1675_v19 = vld [vmem:[%s1842_s9 + $0x20] sm:$0xff]  }
  0x1b   : > { %709 = vperm.xlu1 %1666, %v663_v9   ;;  %699 = vperm.xlu0 %1665, %v661_v10   ;;  %v1674_v16 = vld [vmem:[%s1842_s9 + $0x58] sm:$0xff]   ;;  %v1676_v20 = vld [vmem:[%s1842_s9 + $0x60] sm:$0xff]   ;;  %v669_v21 = vld [vmem:[%s1837_s6 + $0x48] sm:$0xff] }
  0x1c   : > { %1560 = vmatprep.mubr.msk.bf16.mxu1 %vm382_vm1, %v1672_v14  ;;  %v667_v17 = vld [vmem:[%s1837_s6 + $0x38] sm:$0xff]  ;;  %v668_v22 = vld [vmem:[%s1837_s6 + $0x40] sm:$0xff]  ;;  %v1677_v23 = vld [vmem:[%s1842_s9 + $0x28] sm:$0xff]  }
  0x1d   : > { %v1678_v24 = vld [vmem:[%s1842_s9 + $0x68] sm:$0xff]   ;;  %v671_v25 = vld [vmem:[%s1837_s6 + $0x58] sm:$0xff]  ;;  %v670_v26 = vld [vmem:[%s1837_s6 + $0x50] sm:$0xff] }
  0x1e   : > { %v1679_v27 = vld [vmem:[%s1842_s9 + $0x30] sm:$0xff]   ;;  %v673_v29 = vld [vmem:[%s1837_s6 + $0x68] sm:$0xff]  ;;  %v672_v30 = vld [vmem:[%s1837_s6 + $0x60] sm:$0xff] }
  0x1f   : > { %719 = vperm.xlu1 %1666, %v665_v11   ;;  %714 = vperm.xlu0 %1665, %v664_v12   ;;  %v1680_v28 = vld [vmem:[%s1842_s9 + $0x70] sm:$0xff]   ;;  %v1681_v31 = vld [vmem:[%s1842_s9 + $0x38] sm:$0xff]   ;;  %v677_v35 = vld [vmem:[%s1837_s6 + $0x88] sm:$0xff] }
  0x20   : > { %v1682_v32 = vld [vmem:[%s1842_s9 + $0x78] sm:$0xff]   ;;  %v674_v34 = vld [vmem:[%s1837_s6 + $0x70] sm:$0xff]  ;;  %v676_v36 = vld [vmem:[%s1837_s6 + $0x80] sm:$0xff] }
  0x21   : > { %1545 = vmatmul.mubr.msk.bf16.gmra.mrb[4].mxu0 %vm382_vm1, %v1673_v15  ;;  %v675_v33 = vld [vmem:[%s1837_s6 + $0x78] sm:$0xff]  ;;  %v678_v38 = vld [vmem:[%s1837_s6 + $0x90] sm:$0xff]  ;;  %v681_v39 = vld [vmem:[%s1837_s6 + $0xa8] sm:$0xff] }
  0x22   : > { %1561 = vmatmul.mubr.msk.bf16.gmra.mrb[4].mxu1 %vm382_vm1, %v1674_v16  ;;  %1548 = vmatprep.mubr.msk.bf16.mxu0 %vm382_vm1, %v1675_v19  ;;  %v679_v37 = vld [vmem:[%s1837_s6 + $0x98] sm:$0xff]  ;;  %v680_v40 = vld [vmem:[%s1837_s6 + $0xa0] sm:$0xff]  ;;  %v682_v42 = vld [vmem:[%s1837_s6 + $0xb0] sm:$0xff] }
  0x23   : > { %729 = vperm.xlu1 %1666, %v667_v17   ;;  %724 = vperm.xlu0 %1665, %v666_v18   ;;  %v683_v41 = vld [vmem:[%s1837_s6 + $0xb8] sm:$0xff]  ;;  %v685_v43 = vld [vmem:[%s1837_s6 + $0xc8] sm:$0xff]  ;;  %v684_v44 = vld [vmem:[%s1837_s6 + $0xc0] sm:$0xff] }
  0x24   : > { %1564 = vmatprep.mubr.msk.bf16.mxu1 %vm382_vm1, %v1676_v20  ;;  %v687_v45 = vld [vmem:[%s1837_s6 + $0xd8] sm:$0xff]  ;;  %v686_v46 = vld [vmem:[%s1837_s6 + $0xd0] sm:$0xff]  ;;  %v689_v47 = vld [vmem:[%s1837_s6 + $0xe8] sm:$0xff] }
  0x25   : > { %v688_v48 = vld [vmem:[%s1837_s6 + $0xe0] sm:$0xff]  ;;  %v691_v49 = vld [vmem:[%s1837_s6 + $0xf8] sm:$0xff]  ;;  %v690_v50 = vld [vmem:[%s1837_s6 + $0xf0] sm:$0xff] }
  0x26   : > { %v1941_v7 = vld [vmem:[%s2215_s2] ss:$0 sm:$0xff] }
  0x27   : > { %739 = vperm.xlu1 %1666, %v669_v21   ;;  %734 = vperm.xlu0 %1665, %v668_v22  }
  0x29   : > { %1549 = vmatmul.mubr.msk.bf16.gmra.mrb[8].mxu0 %vm382_vm1, %v1677_v23 }
  0x2a   : > { %1565 = vmatmul.mubr.msk.bf16.gmra.mrb[8].mxu1 %vm382_vm1, %v1678_v24  ;;  %1552 = vmatprep.mubr.msk.bf16.mxu0 %vm382_vm1, %v1679_v27 }
  0x2b   : > { %749 = vperm.xlu1 %1666, %v671_v25   ;;  %744 = vperm.xlu0 %1665, %v670_v26  }
  0x2c   : > { %1568 = vmatprep.mubr.msk.bf16.mxu1 %vm382_vm1, %v1680_v28 }
  0x2f   : > { %759 = vperm.xlu1 %1666, %v673_v29   ;;  %754 = vperm.xlu0 %1665, %v672_v30  }
  0x31   : > { %1553 = vmatmul.mubr.msk.bf16.gmra.mrb[12].mxu0 %vm382_vm1, %v1681_v31 }
  0x32   : > { %1569 = vmatmul.mubr.msk.bf16.gmra.mrb[12].mxu1 %vm382_vm1, %v1682_v32 }
  0x33   : > { %769 = vperm.xlu1 %1666, %v675_v33   ;;  %764 = vperm.xlu0 %1665, %v674_v34  }
  0x37   : > { %779 = vperm.xlu1 %1666, %v677_v35   ;;  %774 = vperm.xlu0 %1665, %v676_v36  }
  0x3b   : > { %789 = vperm.xlu1 %1666, %v679_v37   ;;  %784 = vperm.xlu0 %1665, %v678_v38  }
  0x3f   : > { %799 = vperm.xlu1 %1666, %v681_v39   ;;  %794 = vperm.xlu0 %1665, %v680_v40  }
  0x43   : > { %809 = vperm.xlu1 %1666, %v683_v41   ;;  %804 = vperm.xlu0 %1665, %v682_v42  }
  0x47   : > { %819 = vperm.xlu1 %1666, %v685_v43   ;;  %814 = vperm.xlu0 %1665, %v684_v44  }
  0x4b   : > { %829 = vperm.xlu1 %1666, %v687_v45   ;;  %824 = vperm.xlu0 %1665, %v686_v46  }
  0x4f   : > { %839 = vperm.xlu1 %1666, %v689_v47   ;;  %834 = vperm.xlu0 %1665, %v688_v48  }
  0x53   : > { %849 = vperm.xlu1 %1666, %v691_v49   ;;  %844 = vperm.xlu0 %1665, %v690_v50  }
  0x96   : > { %v705_v51 = vpop.permute.xlu1 %704  ;;  %v695_v52 = vpop.permute.xlu0 %694 }
  0x9a   : > { %v1908_v53 = vpop.permute.xlu1 %709  ;;  %v1910_v54 = vpop.permute.xlu0 %699 }
  0x9e   : > { %v1912_v55 = vpop.permute.xlu1 %719  ;;  %v1914_v56 = vpop.permute.xlu0 %714 }
  0xa2   : > { %v1916_v57 = vpop.permute.xlu1 %729  ;;  %v1918_v58 = vpop.permute.xlu0 %724 }
  0xa6   : > { %v1920_v59 = vpop.permute.xlu1 %739  ;;  %v1922_v60 = vpop.permute.xlu0 %734 }
  0xaa   : > { %v1924_v61 = vpop.permute.xlu1 %749  ;;  %v1926_v62 = vpop.permute.xlu0 %744 }
  0xae   : > { %v1928_v63 = vpop.permute.xlu1 %759  ;;  %v1930_v0 = vpop.permute.xlu0 %754 }
  0xb2   : > { %v1932_v1 = vpop.permute.xlu1 %769  ;;  %v1934_v2 = vpop.permute.xlu0 %764 }
  0xb6   : > { %v1936_v3 = vpop.permute.xlu1 %779  ;;  %v775_v4 = vpop.permute.xlu0 %774 }
  0xba   : > { %v790_v5 = vpop.permute.xlu1 %789  ;;  %v785_v6 = vpop.permute.xlu0 %784 }
  0xbe   : > { %v1943_v8 = vpop.permute.xlu1 %799  ;;  %v1945_v9 = vpop.permute.xlu0 %794 }
  0xc2   : > { %v1958_v36 = vpop.permute.xlu1 %809  ;;  %v1960_v41 = vpop.permute.xlu0 %804 }
  0xec   : > { %v1542_v10 = vpop.f32.mrb[0].mxu0 }
  0xed   : > { %v478_v11 = vadd.f32 %v1542_v10, %v1941_v7  ;;  %v1558_v12 = vpop.f32.mrb[0].mxu1  ;;  %v469_v13 = vpop.f32.mrb[1].mxu0 }
  0xee   : > { %v542_v14 = vadd.f32 %v1558_v12, %v1941_v7  ;;  %v470_v15 = vadd.f32 %v1941_v7, %v469_v13  ;;  %v533_v16 = vpop.f32.mrb[1].mxu1  ;;  %v1543_v17 = vpop.f32.mrb[2].mxu0 }
  0xef   : > { %v598_v18 = vmax.f32 %v478_v11, 0.0  ;;  %v534_v19 = vadd.f32 %v1941_v7, %v533_v16  ;;  %v481_v20 = vadd.f32 %v1543_v17, %v1941_v7  ;;  %v1559_v21 = vpop.f32.mrb[2].mxu1  ;;  %v472_v22 = vpop.f32.mrb[3].mxu0 }
  0xf0   : > { %v614_v23 = vmax.f32 %v542_v14, 0.0  ;;  %v596_v24 = vmax.f32 %v470_v15, 0.0  ;;  %v545_v25 = vadd.f32 %v1559_v21, %v1941_v7  ;;  %v473_v26 = vadd.f32 %v1941_v7, %v472_v22  ;;  %v536_v27 = vpop.f32.mrb[3].mxu1 }
  0xf1   : > { %v630_v28 = vmin.f32 %v598_v18, 6.0  ;;  %v612_v29 = vmax.f32 %v534_v19, 0.0  ;;  %v599_v30 = vmax.f32 %v481_v20, 0.0  ;;  %v537_v31 = vadd.f32 %v1941_v7, %v536_v27 }
  0xf2   : > { %v646_v32 = vmin.f32 %v614_v23, 6.0  ;;  %v628_v33 = vmin.f32 %v596_v24, 6.0  ;;  %v615_v34 = vmax.f32 %v545_v25, 0.0  ;;  %v597_v35 = vmax.f32 %v473_v26, 0.0 }
  0xf3   : > { %v854_v37 = vmul.f32 %v705_v51, %v630_v28  ;;  %v644_v38 = vmin.f32 %v612_v29, 6.0  ;;  %v631_v39 = vmin.f32 %v599_v30, 6.0  ;;  %v613_v40 = vmax.f32 %v537_v31, 0.0  ;;  %v1989_v29 = vpop.permute.xlu1 %819 }
  0xf4   : > { %v870_v42 = vmul.f32 %v785_v6, %v646_v32  ;;  %v852_v43 = vmul.f32 %v695_v52, %v628_v33  ;;  %v647_v44 = vmin.f32 %v615_v34, 6.0  ;;  %v629_v45 = vmin.f32 %v597_v35, 6.0  ;;  %v1546_v46 = vpop.f32.mrb[4].mxu0  ;;  %v1994_v34 = vpop.permute.xlu0 %814 }
  0xf5   : > { %v1488_v47 = vpack.c.bf16 %v854_v37, %v854_v37  ;;  %v868_v48 = vmul.f32 %v775_v4, %v644_v38  ;;  %v855_v49 = vmul.f32 %v1908_v53, %v631_v39  ;;  %v645_v50 = vmin.f32 %v613_v40, 6.0  ;;  %v1562_v10 = vpop.f32.mrb[4].mxu1  ;;  %v485_v11 = vpop.f32.mrb[5].mxu0 }
  0xf6   : > { %v1504_v12 = vpack.c.bf16 %v870_v42, %v870_v42  ;;  %v1486_v51 = vpack.c.bf16 %v852_v43, %v852_v43  ;;  %v871_v13 = vmul.f32 %v790_v5, %v647_v44  ;;  %v853_v14 = vmul.f32 %v1910_v54, %v629_v45  ;;  %v549_v15 = vpop.f32.mrb[5].mxu1  ;;  %v1547_v16 = vpop.f32.mrb[6].mxu0 }
  0xf7   : > { %1015 = vst.msk [vmem:[%s1965_s14 + $0x8] sm:$0xf] %vm1012_vm2, %v1488_v47  ;;  %v1502_v52 = vpack.c.bf16 %v868_v48, %v868_v48  ;;  %v1489_v53 = vpack.c.bf16 %v855_v49, %v855_v49  ;;  %v869_v4 = vmul.f32 %v1936_v3, %v645_v50  ;;  %v494_v6 = vadd.f32 %v1546_v46, %v1941_v7  ;;  %v1563_v5 = vpop.f32.mrb[6].mxu1  ;;  %v488_v54 = vpop.f32.mrb[7].mxu0 }
  0xf8   : > { %1031 = vst.msk [vmem:[%s1965_s14 + $0x48] sm:$0xf] %vm1012_vm2, %v1504_v12  ;;  %1013 = vst.msk [vmem:[%s1965_s14] sm:$0xf] %vm1012_vm2, %v1486_v51  ;;  %v1505_v17 = vpack.c.bf16 %v871_v13, %v871_v13  ;;  %v1487_v18 = vpack.c.bf16 %v853_v14, %v853_v14  ;;  %v558_v19 = vadd.f32 %v1562_v10, %v1941_v7  ;;  %v552_v21 = vpop.f32.mrb[7].mxu1 }
  0xf9   : > { %v486_v20 = vadd.f32 %v1941_v7, %v485_v11  ;;  %1029 = vst.msk [vmem:[%s1965_s14 + $0x40] sm:$0xf] %vm1012_vm2, %v1502_v52  ;;  %1016 = vst.msk [vmem:[%s1965_s14 + $0xc] sm:$0xf] %vm1012_vm2, %v1489_v53  ;;  %v1503_v3 = vpack.c.bf16 %v869_v4, %v869_v4  ;;  %v602_v22 = vmax.f32 %v494_v6, 0.0  ;;  %v550_v23 = vadd.f32 %v1941_v7, %v549_v15 }
  0xfa   : > { %v497_v24 = vadd.f32 %v1547_v16, %v1941_v7  ;;  %1032 = vst.msk [vmem:[%s1965_s14 + $0x4c] sm:$0xf] %vm1012_vm2, %v1505_v17  ;;  %1014 = vst.msk [vmem:[%s1965_s14 + $0x4] sm:$0xf] %vm1012_vm2, %v1487_v18  ;;  %v618_v25 = vmax.f32 %v558_v19, 0.0  ;;  %v561_v27 = vadd.f32 %v1563_v5, %v1941_v7  ;;  %v489_v28 = vadd.f32 %v1941_v7, %v488_v54  ;;  %v830_v18 = vpop.permute.xlu1 %829 }
  0xfb   : > { %v600_v26 = vmax.f32 %v486_v20, 0.0  ;;  %1030 = vst.msk [vmem:[%s1965_s14 + $0x44] sm:$0xf] %vm1012_vm2, %v1503_v3  ;;  %v634_v30 = vmin.f32 %v602_v22, 6.0  ;;  %v616_v31 = vmax.f32 %v550_v23, 0.0  ;;  %v553_v33 = vadd.f32 %v1941_v7, %v552_v21  ;;  %v825_v3 = vpop.permute.xlu0 %824 }
  0xfc   : > { %v603_v32 = vmax.f32 %v497_v24, 0.0  ;;  %v650_v35 = vmin.f32 %v618_v25, 6.0  ;;  %v619_v38 = vmax.f32 %v561_v27, 0.0  ;;  %v601_v39 = vmax.f32 %v489_v28, 0.0  ;;  %v1550_v40 = vpop.f32.mrb[8].mxu0 }
  0xfd   : > { %v632_v37 = vmin.f32 %v600_v26, 6.0  ;;  %v858_v42 = vmul.f32 %v1918_v58, %v634_v30  ;;  %v648_v43 = vmin.f32 %v616_v31, 6.0  ;;  %v617_v45 = vmax.f32 %v553_v33, 0.0  ;;  %v1566_v46 = vpop.f32.mrb[8].mxu1  ;;  %v501_v47 = vpop.f32.mrb[9].mxu0 }
  0xfe   : > { %v635_v44 = vmin.f32 %v603_v32, 6.0  ;;  %v874_v48 = vmul.f32 %v1960_v41, %v650_v35  ;;  %v651_v50 = vmin.f32 %v619_v38, 6.0  ;;  %v633_v10 = vmin.f32 %v601_v39, 6.0  ;;  %v565_v11 = vpop.f32.mrb[9].mxu1  ;;  %v1551_v12 = vpop.f32.mrb[10].mxu0 }
  0xff   : > { %v856_v49 = vmul.f32 %v1914_v56, %v632_v37  ;;  %v1492_v51 = vpack.c.bf16 %v858_v42, %v858_v42  ;;  %v872_v13 = vmul.f32 %v1945_v9, %v648_v43  ;;  %v649_v14 = vmin.f32 %v617_v45, 6.0  ;;  %v1567_v15 = vpop.f32.mrb[10].mxu1  ;;  %v504_v16 = vpop.f32.mrb[11].mxu0 }
 0x100   : > { %v859_v58 = vmul.f32 %v1916_v57, %v635_v44  ;;  %v1508_v52 = vpack.c.bf16 %v874_v48, %v874_v48  ;;  %v875_v56 = vmul.f32 %v1958_v36, %v651_v50  ;;  %v857_v41 = vmul.f32 %v1912_v55, %v633_v10  ;;  %v568_v4 = vpop.f32.mrb[11].mxu1 }
 0x101   : > { %v1490_v53 = vpack.c.bf16 %v856_v49, %v856_v49  ;;  %1019 = vst.msk [vmem:[%s1965_s14 + $0x18] sm:$0xf] %vm1012_vm2, %v1492_v51  ;;  %v1506_v6 = vpack.c.bf16 %v872_v13, %v872_v13  ;;  %v873_v9 = vmul.f32 %v1943_v8, %v649_v14  ;;  %v510_v57 = vadd.f32 %v1550_v40, %v1941_v7 }
 0x102   : > { %v1493_v5 = vpack.c.bf16 %v859_v58, %v859_v58  ;;  %1035 = vst.msk [vmem:[%s1965_s14 + $0x58] sm:$0xf] %vm1012_vm2, %v1508_v52  ;;  %v1509_v54 = vpack.c.bf16 %v875_v56, %v875_v56  ;;  %v1491_v36 = vpack.c.bf16 %v857_v41, %v857_v41  ;;  %v574_v17 = vadd.f32 %v1566_v46, %v1941_v7 }
 0x103   : > { %1017 = vst.msk [vmem:[%s1965_s14 + $0x10] sm:$0xf] %vm1012_vm2, %v1490_v53  ;;  %v502_v55 = vadd.f32 %v1941_v7, %v501_v47  ;;  %1033 = vst.msk [vmem:[%s1965_s14 + $0x50] sm:$0xf] %vm1012_vm2, %v1506_v6  ;;  %v1507_v8 = vpack.c.bf16 %v873_v9, %v873_v9  ;;  %v606_v19 = vmax.f32 %v510_v57, 0.0  ;;  %v566_v20 = vadd.f32 %v1941_v7, %v565_v11  ;;  %v835_v53 = vpop.permute.xlu0 %834 }
 0x104   : > { %1020 = vst.msk [vmem:[%s1965_s14 + $0x1c] sm:$0xf] %vm1012_vm2, %v1493_v5  ;;  %v513_v21 = vadd.f32 %v1551_v12, %v1941_v7  ;;  %1036 = vst.msk [vmem:[%s1965_s14 + $0x5c] sm:$0xf] %vm1012_vm2, %v1509_v54  ;;  %v622_v22 = vmax.f32 %v574_v17, 0.0  ;;  %v577_v24 = vadd.f32 %v1567_v15, %v1941_v7  ;;  %v505_v25 = vadd.f32 %v1941_v7, %v504_v16  ;;  %v1554_v26 = vpop.f32.mrb[12].mxu0  ;;  %v840_v5 = vpop.permute.xlu1 %839 }
 0x105   : > { %1018 = vst.msk [vmem:[%s1965_s14 + $0x14] sm:$0xf] %vm1012_vm2, %v1491_v36  ;;  %v604_v23 = vmax.f32 %v502_v55, 0.0  ;;  %1034 = vst.msk [vmem:[%s1965_s14 + $0x54] sm:$0xf] %vm1012_vm2, %v1507_v8  ;;  %v638_v27 = vmin.f32 %v606_v19, 6.0  ;;  %v569_v31 = vadd.f32 %v1941_v7, %v568_v4 }
 0x106   : > { %v620_v28 = vmax.f32 %v566_v20, 0.0  ;;  %v607_v30 = vmax.f32 %v513_v21, 0.0  ;;  %v1570_v32 = vpop.f32.mrb[12].mxu1  ;;  %v517_v33 = vpop.f32.mrb[13].mxu0  ;;  %v654_v35 = vmin.f32 %v622_v22, 6.0  ;;  %v623_v38 = vmax.f32 %v577_v24, 0.0 }
 0x107   : > { %v636_v37 = vmin.f32 %v604_v23, 6.0  ;;  %v605_v39 = vmax.f32 %v505_v25, 0.0  ;;  %v581_v40 = vpop.f32.mrb[13].mxu1  ;;  %v1555_v42 = vpop.f32.mrb[14].mxu0  ;;  %v862_v43 = vmul.f32 %v1926_v62, %v638_v27  ;;  %v621_v46 = vmax.f32 %v569_v31, 0.0 }
 0x108   : > { %v652_v44 = vmin.f32 %v620_v28, 6.0  ;;  %v639_v45 = vmin.f32 %v607_v30, 6.0  ;;  %v1571_v47 = vpop.f32.mrb[14].mxu1  ;;  %v520_v48 = vpop.f32.mrb[15].mxu0  ;;  %v878_v49 = vmul.f32 %v825_v3, %v654_v35  ;;  %v655_v10 = vmin.f32 %v623_v38, 6.0 }
 0x109   : > { %v860_v50 = vmul.f32 %v1922_v60, %v636_v37  ;;  %v637_v11 = vmin.f32 %v605_v39, 6.0  ;;  %v584_v12 = vpop.f32.mrb[15].mxu1  ;;  %v1496_v51 = vpack.c.bf16 %v862_v43, %v862_v43  ;;  %v653_v62 = vmin.f32 %v621_v46, 6.0  ;;  %v845_v25 = vpop.permute.xlu0 %844 }
 0x10a   : > { %v876_v13 = vmul.f32 %v1994_v34, %v652_v44  ;;  %v863_v58 = vmul.f32 %v1924_v61, %v639_v45  ;;  %v1512_v14 = vpack.c.bf16 %v878_v49, %v878_v49  ;;  %v879_v16 = vmul.f32 %v830_v18, %v655_v10  ;;  %v850_v37 = vpop.permute.xlu1 %849 }
 0x10b   : > { %v1494_v15 = vpack.c.bf16 %v860_v50, %v860_v50  ;;  %v861_v52 = vmul.f32 %v1920_v59, %v637_v11  ;;  %1023 = vst.msk [vmem:[%s1965_s14 + $0x28] sm:$0xf] %vm1012_vm2, %v1496_v51  ;;  %v877_v41 = vmul.f32 %v1989_v29, %v653_v62  ;;  %v526_v34 = vadd.f32 %v1554_v26, %v1941_v7 }
 0x10c   : > { %v1510_v60 = vpack.c.bf16 %v876_v13, %v876_v13  ;;  %v1497_v56 = vpack.c.bf16 %v863_v58, %v863_v58  ;;  %1039 = vst.msk [vmem:[%s1965_s14 + $0x68] sm:$0xf] %vm1012_vm2, %v1512_v14  ;;  %v1513_v61 = vpack.c.bf16 %v879_v16, %v879_v16  ;;  %v590_v59 = vadd.f32 %v1570_v32, %v1941_v7 }
 0x10d   : > { %1021 = vst.msk [vmem:[%s1965_s14 + $0x20] sm:$0xf] %vm1012_vm2, %v1494_v15  ;;  %v1495_v4 = vpack.c.bf16 %v861_v52, %v861_v52  ;;  %v518_v6 = vadd.f32 %v1941_v7, %v517_v33  ;;  %v1511_v29 = vpack.c.bf16 %v877_v41, %v877_v41  ;;  %v610_v9 = vmax.f32 %v526_v34, 0.0 }
 0x10e   : > { %1037 = vst.msk [vmem:[%s1965_s14 + $0x60] sm:$0xf] %vm1012_vm2, %v1510_v60  ;;  %1024 = vst.msk [vmem:[%s1965_s14 + $0x2c] sm:$0xf] %vm1012_vm2, %v1497_v56  ;;  %v582_v57 = vadd.f32 %v1941_v7, %v581_v40  ;;  %v529_v54 = vadd.f32 %v1555_v42, %v1941_v7  ;;  %v626_v36 = vmax.f32 %v590_v59, 0.0  ;;  %v593_v55 = vadd.f32 %v1571_v47, %v1941_v7 }
 0x10f   : > { %1040 = vst.msk [vmem:[%s1965_s14 + $0x6c] sm:$0xf] %vm1012_vm2, %v1513_v61  ;;  %1022 = vst.msk [vmem:[%s1965_s14 + $0x24] sm:$0xf] %vm1012_vm2, %v1495_v4  ;;  %v608_v17 = vmax.f32 %v518_v6, 0.0  ;;  %v521_v18 = vadd.f32 %v1941_v7, %v520_v48  ;;  %v642_v8 = vmin.f32 %v610_v9, 6.0  ;;  %v585_v21 = vadd.f32 %v1941_v7, %v584_v12 }
 0x110   : > { %1038 = vst.msk [vmem:[%s1965_s14 + $0x64] sm:$0xf] %vm1012_vm2, %v1511_v29  ;;  %v624_v19 = vmax.f32 %v582_v57, 0.0  ;;  %v611_v20 = vmax.f32 %v529_v54, 0.0  ;;  %v658_v3 = vmin.f32 %v626_v36, 6.0  ;;  %v627_v23 = vmax.f32 %v593_v55, 0.0 }
 0x111   : > { %v640_v22 = vmin.f32 %v608_v17, 6.0  ;;  %v609_v24 = vmax.f32 %v521_v18, 0.0  ;;  %v866_v26 = vmul.f32 %v1934_v2, %v642_v8  ;;  %v625_v30 = vmax.f32 %v585_v21, 0.0 }
 0x112   : > { %v656_v27 = vmin.f32 %v624_v19, 6.0  ;;  %v643_v28 = vmin.f32 %v611_v20, 6.0  ;;  %v882_v31 = vmul.f32 %v845_v25, %v658_v3  ;;  %v659_v33 = vmin.f32 %v627_v23, 6.0 }
 0x113   : > { %v864_v32 = vmul.f32 %v1930_v0, %v640_v22  ;;  %v641_v35 = vmin.f32 %v609_v24, 6.0  ;;  %v1500_v7 = vpack.c.bf16 %v866_v26, %v866_v26  ;;  %v657_v40 = vmin.f32 %v625_v30, 6.0 }
 0x114   : > { %v880_v38 = vmul.f32 %v835_v53, %v656_v27  ;;  %v867_v39 = vmul.f32 %v1932_v1, %v643_v28  ;;  %v1516_v2 = vpack.c.bf16 %v882_v31, %v882_v31  ;;  %v883_v43 = vmul.f32 %v850_v37, %v659_v33  ;;  %1051 = sbr.rel (!%p1822_p4) target bundleno = 353 (0x161), region = 40 }
 0x115   : > { %v1498_v42 = vpack.c.bf16 %v864_v32, %v864_v32  ;;  %v865_v0 = vmul.f32 %v1928_v63, %v641_v35  ;;  %1027 = vst.msk [vmem:[%s1965_s14 + $0x38] sm:$0xf] %vm1012_vm2, %v1500_v7  ;;  %v881_v46 = vmul.f32 %v840_v5, %v657_v40 }
 0x116   : > { %v1514_v44 = vpack.c.bf16 %v880_v38, %v880_v38  ;;  %v1501_v45 = vpack.c.bf16 %v867_v39, %v867_v39  ;;  %1043 = vst.msk [vmem:[%s1965_s14 + $0x78] sm:$0xf] %vm1012_vm2, %v1516_v2  ;;  %v1517_v47 = vpack.c.bf16 %v883_v43, %v883_v43 }
 0x117   : > { %1025 = vst.msk [vmem:[%s1965_s14 + $0x30] sm:$0xf] %vm1012_vm2, %v1498_v42  ;;  %v1499_v1 = vpack.c.bf16 %v865_v0, %v865_v0  ;;  %v1515_v48 = vpack.c.bf16 %v881_v46, %v881_v46 }
 0x118   : > { %1041 = vst.msk [vmem:[%s1965_s14 + $0x70] sm:$0xf] %vm1012_vm2, %v1514_v44  ;;  %1028 = vst.msk [vmem:[%s1965_s14 + $0x3c] sm:$0xf] %vm1012_vm2, %v1501_v45 }
 0x119   : > { %1044 = vst.msk [vmem:[%s1965_s14 + $0x7c] sm:$0xf] %vm1012_vm2, %v1517_v47  ;;  %1026 = vst.msk [vmem:[%s1965_s14 + $0x34] sm:$0xf] %vm1012_vm2, %v1499_v1 }
 0x11a   : > { %1042 = vst.msk [vmem:[%s1965_s14 + $0x74] sm:$0xf] %vm1012_vm2, %v1515_v48 }
 0x11b   : > { %s2226_s15 = smov (!%p1054_p8, %s1053_s15), 32 }
 0x11c   : > { %s1471_s25 = sshll.u32 %s2226_s15, 6 }
 0x11d   : > { %p1474_p9 = scmp.eq.s32.totalorder %s1471_s25, 0 }
 0x11e   : > { %s2091_s27 = sshrl.u32 (!%p1474_p9), %s2226_s15, 5 }
 0x11f   : > { %1062 = sbr.rel (%p1474_p9) target bundleno = 353 (0x161), region = 44  ;;  %p1475_p10 = scmp.le.s32.totalorder (!%p1474_p9), %s2091_s27, 0 }
 0x126   : > { %1345 = sbr.rel (%p1475_p10) target bundleno = 332 (0x14c), region = 119  ;;  %s2219_s18 = smov (!%p1475_p10), %s2085_s24 }
 0x127   : > { %s2220_s23 = smov (!%p1475_p10), %s1965_s14  ;;  %s2100_s26 = smov (!%p1475_p10), 0  }
 0x128   : > { %s2102_s28 = smov (!%p1475_p10), 0  }
 0x12d LB: >> { %v1078_v63 = vld [vmem:[%s1745_s23] sm:$0xf]  ;;  %v1080_v49 = vld [vmem:[%s1745_s23 + $0x4] sm:$0xf]  ;;  %v1082_v50 = vld [vmem:[%s1745_s23 + $0x8] sm:$0xf]  ;;  %s1753_s28 = sphi %s2102_s28, %s1072_s28   ;;  %s1749_s26 = sphi %s2100_s26, %s2221_s26   ;;  %s1745_s23 = sphi %s2220_s23, %s1147_s23   ;;  %s1741_s18 = sphi %s2219_s18, %s1148_s18  }
 0x12e   : >> { %1079 = vst [vmem:[%s1741_s18] sm:$0xf] %v1078_v63  ;;  %1081 = vst [vmem:[%s1741_s18 + $0x4] sm:$0xf] %v1080_v49  ;;  %v1084_v10 = vld [vmem:[%s1745_s23 + $0xc] sm:$0xf]  ;;  %s1142_s29 = sadd.s32 1, %s1749_s26 }
 0x12f   : >> { %1083 = vst [vmem:[%s1741_s18 + $0x8] sm:$0xf] %v1082_v50  ;;  %v1086_v11 = vld [vmem:[%s1745_s23 + $0x10] sm:$0xf]  ;;  %v1088_v12 = vld [vmem:[%s1745_s23 + $0x14] sm:$0xf]  ;;  %p1143_p11 = scmp.ge.s32.totalorder %s1142_s29, %s2091_s27 }
 0x130   : >> { %1085 = vst [vmem:[%s1741_s18 + $0xc] sm:$0xf] %v1084_v10  ;;  %1087 = vst [vmem:[%s1741_s18 + $0x10] sm:$0xf] %v1086_v11  ;;  %v1090_v51 = vld [vmem:[%s1745_s23 + $0x18] sm:$0xf] }
 0x131   : >> { %1089 = vst [vmem:[%s1741_s18 + $0x14] sm:$0xf] %v1088_v12  ;;  %v1092_v13 = vld [vmem:[%s1745_s23 + $0x1c] sm:$0xf]  ;;  %v1094_v58 = vld [vmem:[%s1745_s23 + $0x20] sm:$0xf] }
 0x132   : >> { %1091 = vst [vmem:[%s1741_s18 + $0x18] sm:$0xf] %v1090_v51  ;;  %1093 = vst [vmem:[%s1741_s18 + $0x1c] sm:$0xf] %v1092_v13  ;;  %v1096_v62 = vld [vmem:[%s1745_s23 + $0x24] sm:$0xf] }
 0x133   : >> { %1095 = vst [vmem:[%s1741_s18 + $0x20] sm:$0xf] %v1094_v58  ;;  %v1098_v14 = vld [vmem:[%s1745_s23 + $0x28] sm:$0xf]  ;;  %v1100_v15 = vld [vmem:[%s1745_s23 + $0x2c] sm:$0xf] }
 0x134   : >> { %1097 = vst [vmem:[%s1741_s18 + $0x24] sm:$0xf] %v1096_v62  ;;  %1099 = vst [vmem:[%s1741_s18 + $0x28] sm:$0xf] %v1098_v14  ;;  %v1102_v16 = vld [vmem:[%s1745_s23 + $0x30] sm:$0xf] }
 0x135   : >> { %1101 = vst [vmem:[%s1741_s18 + $0x2c] sm:$0xf] %v1100_v15  ;;  %v1104_v52 = vld [vmem:[%s1745_s23 + $0x34] sm:$0xf]  ;;  %v1106_v53 = vld [vmem:[%s1745_s23 + $0x38] sm:$0xf] }
 0x136   : >> { %1103 = vst [vmem:[%s1741_s18 + $0x30] sm:$0xf] %v1102_v16  ;;  %1105 = vst [vmem:[%s1741_s18 + $0x34] sm:$0xf] %v1104_v52  ;;  %v1108_v60 = vld [vmem:[%s1745_s23 + $0x3c] sm:$0xf] }
 0x137   : >> { %1107 = vst [vmem:[%s1741_s18 + $0x38] sm:$0xf] %v1106_v53  ;;  %v1110_v56 = vld [vmem:[%s1745_s23 + $0x40] sm:$0xf]  ;;  %v1112_v41 = vld [vmem:[%s1745_s23 + $0x44] sm:$0xf] }
 0x138   : >> { %1109 = vst [vmem:[%s1741_s18 + $0x3c] sm:$0xf] %v1108_v60  ;;  %1111 = vst [vmem:[%s1741_s18 + $0x40] sm:$0xf] %v1110_v56  ;;  %v1114_v34 = vld [vmem:[%s1745_s23 + $0x48] sm:$0xf] }
 0x139   : >> { %1113 = vst [vmem:[%s1741_s18 + $0x44] sm:$0xf] %v1112_v41  ;;  %v1116_v61 = vld [vmem:[%s1745_s23 + $0x4c] sm:$0xf]  ;;  %v1118_v4 = vld [vmem:[%s1745_s23 + $0x50] sm:$0xf] }
 0x13a   : >> { %1115 = vst [vmem:[%s1741_s18 + $0x48] sm:$0xf] %v1114_v34  ;;  %1117 = vst [vmem:[%s1741_s18 + $0x4c] sm:$0xf] %v1116_v61  ;;  %v1120_v59 = vld [vmem:[%s1745_s23 + $0x54] sm:$0xf] }
 0x13b   : >> { %1119 = vst [vmem:[%s1741_s18 + $0x50] sm:$0xf] %v1118_v4  ;;  %v1122_v6 = vld [vmem:[%s1745_s23 + $0x58] sm:$0xf]  ;;  %v1124_v5 = vld [vmem:[%s1745_s23 + $0x5c] sm:$0xf] }
 0x13c   : >> { %1121 = vst [vmem:[%s1741_s18 + $0x54] sm:$0xf] %v1120_v59  ;;  %1123 = vst [vmem:[%s1741_s18 + $0x58] sm:$0xf] %v1122_v6  ;;  %v1126_v29 = vld [vmem:[%s1745_s23 + $0x60] sm:$0xf] }
 0x13d   : >> { %1125 = vst [vmem:[%s1741_s18 + $0x5c] sm:$0xf] %v1124_v5  ;;  %v1128_v9 = vld [vmem:[%s1745_s23 + $0x64] sm:$0xf]  ;;  %v1130_v57 = vld [vmem:[%s1745_s23 + $0x68] sm:$0xf] }
 0x13e   : >> { %1127 = vst [vmem:[%s1741_s18 + $0x60] sm:$0xf] %v1126_v29  ;;  %1129 = vst [vmem:[%s1741_s18 + $0x64] sm:$0xf] %v1128_v9  ;;  %v1132_v54 = vld [vmem:[%s1745_s23 + $0x6c] sm:$0xf] }
 0x13f   : >> { %1131 = vst [vmem:[%s1741_s18 + $0x68] sm:$0xf] %v1130_v57  ;;  %v1134_v36 = vld [vmem:[%s1745_s23 + $0x70] sm:$0xf]  ;;  %v1136_v17 = vld [vmem:[%s1745_s23 + $0x74] sm:$0xf] }
 0x140   : >> { %1133 = vst [vmem:[%s1741_s18 + $0x6c] sm:$0xf] %v1132_v54  ;;  %1135 = vst [vmem:[%s1741_s18 + $0x70] sm:$0xf] %v1134_v36  ;;  %v1138_v55 = vld [vmem:[%s1745_s23 + $0x78] sm:$0xf] }
 0x141   : >> { %1137 = vst [vmem:[%s1741_s18 + $0x74] sm:$0xf] %v1136_v17  ;;  %v1140_v18 = vld [vmem:[%s1745_s23 + $0x7c] sm:$0xf]  ;;  %1139 = vst [vmem:[%s1741_s18 + $0x78] sm:$0xf] %v1138_v55 }
 0x142   : >> { %1141 = vst [vmem:[%s1741_s18 + $0x7c] sm:$0xf] %v1140_v18  ;;  %s2228_s29 = smov (%p1143_p11, %s1142_s29), 0  ;;  %s1072_s28 = sadd.s32 1, %s1753_s28  }
 0x143   : >> { %s1476_s30 = sshll.u32 %s2228_s29, 7  ;;  %p1071_p12 = scmp.ge.s32.totalorder %s1072_s28, %s2091_s27 }
 0x144   : >> { %s1147_s23 = scalar_lea.vmem %s1965_s14, %s1476_s30 [#allocation2]   ;;  %s1148_s18 = scalar_lea.vmem %s2085_s24, %s1476_s30  }
 0x145   : >> { %s2221_s26 = smov %s2228_s29  ;;  %1074 = sbr.rel (!%p1071_p12) target bundleno = 301 (0x12d), region = 125 }
 0x14c PF: > { %s2195_s5 = sand.u32 31, %s2226_s15   ;;  %s1519_s6 = sshll.u32 %s2091_s27, 7 }
 0x14d   : > { %s1153_s7 = scalar_lea.vmem %s1965_s14, %s1519_s6 [#allocation2]   ;;  %s1155_s8 = scalar_lea.vmem %s2085_s24, %s1519_s6  }
 0x14e   : > { %p1481_p13 = scmp.le.s32.totalorder %s2195_s5, 0 }
 0x14f   : > { %s1755_s9 = smov (!%p1481_p13), %s1155_s8   ;;  %s1759_s10 = smov (!%p1481_p13), %s1153_s7  }
 0x150   : > { %1359 = sbr.rel (%p1481_p13) target bundleno = 353 (0x161), region = 130  ;;  %s1763_s11 = smov (!%p1481_p13), 0  }
 0x151   : > { %s1767_s12 = smov (!%p1481_p13), 0  }
 0x157 LB: >> { %v1165_v8 = vld [vmem:[%s1761_s10] sm:$0xf]  ;;  %s1167_s13 = sadd.s32 1, %s1765_s11  ;;  %s1159_s12 = sadd.s32 1, %s1769_s12   ;;  %s1769_s12 = sphi %s1767_s12, %s1159_s12   ;;  %s1765_s11 = sphi %s1763_s11, %s1764_s11   ;;  %s1761_s10 = sphi %s1759_s10, %s1172_s10   ;;  %s1757_s9 = sphi %s1755_s9, %s1173_s9  }
 0x158   : >> { %1166 = vst [vmem:[%s1757_s9] sm:$0xf] %v1165_v8  ;;  %p1168_p0 = scmp.ge.s32.totalorder %s1167_s13, %s2195_s5  ;;  %p1158_p1 = scmp.ge.s32.totalorder %s1159_s12, %s2195_s5 }
 0x15a   : >> { %s2230_s13 = smov (%p1168_p0, %s1167_s13), 0  ;;  %1161 = sbr.rel (!%p1158_p1) target bundleno = 343 (0x157), region = 136 }
 0x15b   : >> { %s1482_s14 = sshll.u32 %s2230_s13, 2  ;;  %s1764_s11 = smov %s2230_s13  }
 0x15c   : >> { %s1172_s10 = scalar_lea.vmem %s1153_s7, %s1482_s14 [#allocation2]   ;;  %s1173_s9 = scalar_lea.vmem %s1155_s8, %s1482_s14  }
 0x161 PF: > { %p11_p2 = scmp.ge.s32.totalorder %s1812_s19, 5   ;;  %s2222_s15 = smov %s1733_s16 }
 0x162   : > { %s2223_s16 = smov %s1820_s22  ;;  %s2224_s17 = smov %s1812_s19 }
 0x163   :  { %13 = sbr.rel (!%p11_p2) target bundleno = 2 (0x2), region = 147 }

</bundles_post_ra>
